<compile_context>
chip_gen: v7x
topology: tpu7x:2x2x1
jax: 0.10.0
libtpu: 0.0.40
codegen_flags: <defaults>
</compile_context>

<pallas_src>
import functools
import math

import jax
import jax.numpy as jnp
from jax import lax
from jax.experimental import pallas as pl
from jax.experimental.pallas import tpu as pltpu


def _round_up(x, m):
    return ((x + m - 1) // m) * m


def _gelu(x, approx):
    if approx:
        # tanh formulation lowers to the EUP (its own VLIW slot). NOT bit-exact vs torch.
        return jax.nn.gelu(x, approximate=True)
    # torch.nn.functional.gelu default: exact erf-based gelu.
    return 0.5 * x * (1.0 + lax.erf(x * (1.0 / math.sqrt(2.0))))


def _ffn_kernel(x_ref, w1_ref, b1_ref, w2_ref, b2_ref, o_ref, acc_ref, *, approx_gelu):
    # x_ref : (tm, D) token tile (f32 or bf16)
    # w1_ref: (D, th), b1_ref: (1, th) f32
    # w2_ref: (th, D), b2_ref: (1, D) f32
    # acc_ref: (tm, D) f32 scratch accumulator over hidden-dim chunks.
    k = pl.program_id(1)

    @pl.when(k == 0)
    def _():
        acc_ref[...] = jnp.zeros_like(acc_ref)

    h = jnp.dot(x_ref[...], w1_ref[...], preferred_element_type=jnp.float32)
    h = _gelu(h + b1_ref[...], approx_gelu)          # bias + gelu in f32
    # dropout(p=0.0) is the identity -> nothing to do.
    # Cast is a no-op for f32 weights; bf16 weights -> bf16 MXU operands (f32 accumulate).
    acc_ref[...] += jnp.dot(h.astype(w2_ref.dtype), w2_ref[...],
                            preferred_element_type=jnp.float32)

    @pl.when(k == pl.num_programs(1) - 1)
    def _():
        o_ref[...] = (acc_ref[...] + b2_ref[...]).astype(o_ref.dtype)


def feed_forward(x, w1, b1, w2, b2, *, tm=256, hidden_chunk=None, approx_gelu=False):
    """x: (B, S, D).  w1: (D, H), b1: (H,), w2: (H, D), b2: (D,).

    MXU operand dtype follows w1.dtype (store bf16 weights once via cast_params for
    bf16 matmuls; accumulation / bias / gelu stay f32).  Output dtype matches x.dtype.
    hidden_chunk: optional explicit hidden-dim chunk (must divide H, multiple of 128);
    by default the largest chunk that fits the per-generation VMEM budget is chosen
    (full residency when possible).
    """
    B, S, D = x.shape
    H = w1.shape[1]
    out_dtype = x.dtype
    M = B * S

    compute_dtype = w1.dtype
    x_bpe = jnp.dtype(compute_dtype).itemsize
    w_bpe = x_bpe
    o_bpe = jnp.dtype(out_dtype).itemsize

    # Row granularity: sub-32-bit dtypes pack rows along sublanes (8 f32, 16 bf16).
    row_align = 8 * max(1, 4 // x_bpe)

    tm_eff = min(tm, _round_up(M, row_align))
    tm_eff = max(row_align, _round_up(tm_eff, row_align))
    grid_m = pl.cdiv(M, tm_eff)
    # Give both v7x TensorCores work on the "parallel" token axis when rows allow.
    if grid_m == 1 and M >= 2 * 128:
        tm_eff = max(row_align, _round_up(pl.cdiv(M, 2), row_align))
        grid_m = pl.cdiv(M, tm_eff)

    # Generation-aware VMEM budget (128 MiB on v5e/v6e, 64 MiB/TC on v7x).
    try:
        vmem_cap = int(pltpu.get_tpu_info().vmem_capacity_bytes)
    except Exception:
        vmem_cap = 64 * 1024 * 1024
    budget = max(vmem_cap - 12 * 1024 * 1024, 16 * 1024 * 1024)

    def _vmem_need(th, resident):
        wbuf = 1 if resident else 2                       # Buffered(1) when resident
        return (wbuf * 2 * D * th * w_bpe                 # w1 (D,th) + w2 (th,D)
                + wbuf * th * 4 + D * 4                   # b1 chunk(s) + b2
                + 2 * tm_eff * D * (x_bpe + o_bpe)        # double-buffered x / out tiles
                + tm_eff * D * 4                          # f32 accumulator scratch
                + tm_eff * th * 4                         # f32 fc1/gelu intermediate
                + tm_eff * th * w_bpe)                    # fc2 operand cast of intermediate

    if hidden_chunk is not None:
        th = min(int(hidden_chunk), H)
        if th < H and (th % 128 != 0 or H % th != 0):
            raise ValueError("hidden_chunk must divide H and be a multiple of 128")
    elif _vmem_need(H, True) <= budget:
        th = H                                            # whole weights VMEM-resident
    else:
        cands = sorted((d for d in range(128, H, 128) if H % d == 0), reverse=True)
        th = next((c for c in cands if _vmem_need(c, False) <= budget),
                  cands[-1] if cands else H)
    grid_h = pl.cdiv(H, th)
    resident = grid_h == 1

    need = _vmem_need(th, resident)
    vmem_limit = int(min(max(int(need * 1.25) + (4 << 20), 32 << 20), budget))

    x2d = x.reshape(M, D)
    if x2d.dtype != compute_dtype:
        x2d = x2d.astype(compute_dtype)
    b1_2d = b1.reshape(1, H).astype(jnp.float32)
    b2_2d = b2.reshape(1, D).astype(jnp.float32)

    def _spec(shape, index_map, single_buffer):
        if single_buffer:
            # Grid-invariant block: one resident buffer instead of a double buffer.
            return pl.BlockSpec(shape, index_map, pipeline_mode=pl.Buffered(1))
        return pl.BlockSpec(shape, index_map)

    in_specs = [
        pl.BlockSpec((tm_eff, D), lambda i, k: (i, 0)),     # x token tile
        _spec((D, th), lambda i, k: (0, k), resident),      # w1 chunk
        _spec((1, th), lambda i, k: (0, k), resident),      # b1 chunk
        _spec((th, D), lambda i, k: (k, 0), resident),      # w2 chunk
        _spec((1, D), lambda i, k: (0, 0), True),           # b2 (always grid-invariant)
    ]
    out_spec = pl.BlockSpec((tm_eff, D), lambda i, k: (i, 0))

    cost = pl.CostEstimate(
        flops=int(4 * M * D * H),
        transcendentals=int(M * H),  # one erf/tanh per fc1 activation
        bytes_accessed=int(M * D * (x_bpe + o_bpe)
                           + (2 * D * H * w_bpe + (H + D) * 4)
                           * (1 if resident else grid_m)),
    )

    out = pl.pallas_call(
        functools.partial(_ffn_kernel, approx_gelu=approx_gelu),
        out_shape=jax.ShapeDtypeStruct((M, D), out_dtype),
        grid_spec=pltpu.PrefetchScalarGridSpec(
            num_scalar_prefetch=0,
            grid=(grid_m, grid_h),
            in_specs=in_specs,
            out_specs=out_spec,
            scratch_shapes=[pltpu.VMEM((tm_eff, D), jnp.float32)],
        ),
        compiler_params=pltpu.CompilerParams(
            dimension_semantics=("parallel", "arbitrary"),
            vmem_limit_bytes=vmem_limit,
        ),
        cost_estimate=cost,
    )(x2d, w1, b1_2d, w2, b2_2d)

    return out.reshape(B, S, D)


def init_params(key, dim, hidden_dim, dtype=jnp.float32):
    """Mirror of the torch module init: trunc_normal(std=0.02, +/-2 cutoff) weights,
    uniform(+/-1/sqrt(fan_in)) biases.  Weights returned as (in, out)."""
    k1, k2, k3, k4 = jax.random.split(key, 4)
    w1 = 0.02 * jax.random.truncated_normal(k1, -2.0, 2.0, (dim, hidden_dim), dtype)
    w2 = 0.02 * jax.random.truncated_normal(k2, -2.0, 2.0, (hidden_dim, dim), dtype)
    b1 = jax.random.uniform(k3, (hidden_dim,), dtype,
                            -1.0 / math.sqrt(dim), 1.0 / math.sqrt(dim))
    b2 = jax.random.uniform(k4, (dim,), dtype,
                            -1.0 / math.sqrt(hidden_dim), 1.0 / math.sqrt(hidden_dim))
    return w1, b1, w2, b2


def cast_params(params, dtype=jnp.bfloat16):
    """Cast weights ONCE at init for bf16 MXU operands (biases stay f32 in-kernel)."""
    w1, b1, w2, b2 = params
    return w1.astype(dtype), b1, w2.astype(dtype), b2


def _reference(x, w1, b1, w2, b2):
    h = _gelu(x.astype(jnp.float32) @ w1.astype(jnp.float32) + b1, approx=False)
    return h @ w2.astype(jnp.float32) + b2


if __name__ == "__main__":
    key = jax.random.PRNGKey(0)

    # 1) Tiny ViT-like config (dim=32 -> hidden=128, batch=2, seq=8): exact f32 check.
    B, S, D = 2, 8, 32
    H = 4 * D
    kx, kp, key = jax.random.split(key, 3)
    x = jax.random.normal(kx, (B, S, D), jnp.float32)
    p = init_params(kp, D, H)
    y = jax.block_until_ready(feed_forward(x, *p))
    y_ref = _reference(x, *p)
    assert y.shape == (B, S, D)
    assert jnp.allclose(y, y_ref, atol=1e-5, rtol=1e-5), "mismatch vs reference (small)"

    # 2) Ragged token count (M = 280 -> one full 256-row tile + masked partial tile),
    #    multi-step "parallel" token grid, f32 path.
    B2, S2, D2 = 4, 70, 128
    H2 = 4 * D2
    kx2, kp2, key = jax.random.split(key, 3)
    x2 = jax.random.normal(kx2, (B2, S2, D2), jnp.float32)
    p2 = init_params(kp2, D2, H2)
    y2 = jax.block_until_ready(feed_forward(x2, *p2, tm=256))
    y2_ref = _reference(x2, *p2)
    assert y2.shape == (B2, S2, D2)
    assert jnp.allclose(y2, y2_ref, atol=1e-4, rtol=1e-4), "mismatch vs reference (ragged)"

    # 3) bf16 weights (cast once) -> bf16 MXU operands, f32 accumulate + f32 epilogue.
    p2_bf16 = cast_params(p2, jnp.bfloat16)
    y3 = jax.block_until_ready(feed_forward(x2, *p2_bf16, tm=256))
    assert y3.dtype == x2.dtype
    assert jnp.allclose(y3, y2_ref, atol=3e-2, rtol=3e-2), "mismatch vs reference (bf16)"

    # 4) Forced hidden-dim chunking (v7x-style weight streaming + f32 accumulator path).
    y4 = jax.block_until_ready(feed_forward(x2, *p2, tm=256, hidden_chunk=128))
    assert jnp.allclose(y4, y2_ref, atol=1e-4, rtol=1e-4), "mismatch vs reference (chunked)"

    print("KERNEL_OK")
</pallas_src>

<mosaic_0001>
module attributes {stable_mosaic.version = 11 : i64} {
  func.func @_ffn_kernel(%arg0: i32, %arg1: i32, %arg2: memref<16x32xf32, #tpu.memory_space<vmem>>, %arg3: memref<32x128xf32, #tpu.memory_space<vmem>>, %arg4: memref<1x128xf32, #tpu.memory_space<vmem>>, %arg5: memref<128x32xf32, #tpu.memory_space<vmem>>, %arg6: memref<1x32xf32, #tpu.memory_space<vmem>>, %arg7: memref<16x32xf32, #tpu.memory_space<vmem>>, %arg8: memref<16x32xf32, #tpu.memory_space<vmem>>) attributes {dimension_semantics = [#tpu.dimension_semantics<parallel>, #tpu.dimension_semantics<arbitrary>], iteration_bounds = array<i64: 1, 1>, scalar_prefetch = 0 : i64, scratch_operands = 1 : i64, tpu.core_type = #tpu.core_type<tc>, window_params = [{transform_indices = @transform_0, window_bounds = array<i64: 16, 32>}, {pipeline_mode = #tpu.pipeline_mode<synchronous>, transform_indices = @transform_1, window_bounds = array<i64: 32, 128>}, {pipeline_mode = #tpu.pipeline_mode<synchronous>, transform_indices = @transform_2, window_bounds = array<i64: 1, 128>}, {pipeline_mode = #tpu.pipeline_mode<synchronous>, transform_indices = @transform_3, window_bounds = array<i64: 128, 32>}, {pipeline_mode = #tpu.pipeline_mode<synchronous>, transform_indices = @transform_4, window_bounds = array<i64: 1, 32>}, {transform_indices = @transform_5, window_bounds = array<i64: 16, 32>}]} {
    %c0_i32 = arith.constant 0 : i32
    %0 = arith.cmpi eq, %arg1, %c0_i32 : i32
    %1 = arith.extui %0 : i1 to i32
    %c0_i32_0 = arith.constant 0 : i32
    %2 = arith.cmpi ne, %1, %c0_i32_0 : i32
    scf.if %2 {
      %cst_18 = arith.constant 0.000000e+00 : f32
      %25 = vector.broadcast %cst_18 : f32 to vector<16x32xf32>
      %c0_19 = arith.constant 0 : index
      %c0_20 = arith.constant 0 : index
      %26 = vector.load %arg8[%c0_19, %c0_20] : memref<16x32xf32, #tpu.memory_space<vmem>>, vector<16x32xf32>
      tpu.vector_store %arg8[%c0_19, %c0_20], %25 {strides = array<i32>} : memref<16x32xf32, #tpu.memory_space<vmem>>, vector<16x32xf32>,
    } else {
    }
    %c0 = arith.constant 0 : index
    %c0_1 = arith.constant 0 : index
    %3 = vector.load %arg2[%c0, %c0_1] : memref<16x32xf32, #tpu.memory_space<vmem>>, vector<16x32xf32>
    %c0_2 = arith.constant 0 : index
    %c0_3 = arith.constant 0 : index
    %4 = vector.load %arg3[%c0_2, %c0_3] : memref<32x128xf32, #tpu.memory_space<vmem>>, vector<32x128xf32>
    %cst = arith.constant dense<0.000000e+00> : vector<16x128xf32>
    %5 = tpu.matmul %3, %4, %cst {dimension_numbers = #tpu.dot_dimension_numbers<[1], [0], [0], [1], [0, 0, 1, 1], [], []>} : vector<16x32xf32>, vector<32x128xf32>, vector<16x128xf32> -> vector<16x128xf32>
    %c0_4 = arith.constant 0 : index
    %c0_5 = arith.constant 0 : index
    %6 = vector.load %arg4[%c0_4, %c0_5] : memref<1x128xf32, #tpu.memory_space<vmem>>, vector<1x128xf32>
    %7 = vector.broadcast %6 : vector<1x128xf32> to vector<16x128xf32>
    %8 = arith.addf %5, %7 : vector<16x128xf32>
    %cst_6 = arith.constant 5.000000e-01 : f32
    %9 = vector.broadcast %cst_6 : f32 to vector<16x128xf32>
    %10 = arith.mulf %9, %8 : vector<16x128xf32>
    %cst_7 = arith.constant 0.707106769 : f32
    %11 = vector.broadcast %cst_7 : f32 to vector<16x128xf32>
    %12 = arith.mulf %8, %11 : vector<16x128xf32>
    %13 = math.erf %12 : vector<16x128xf32>
    %cst_8 = arith.constant 1.000000e+00 : f32
    %14 = vector.broadcast %cst_8 : f32 to vector<16x128xf32>
    %15 = arith.addf %14, %13 : vector<16x128xf32>
    %16 = arith.mulf %10, %15 : vector<16x128xf32>
    %c0_9 = arith.constant 0 : index
    %c0_10 = arith.constant 0 : index
    %17 = vector.load %arg8[%c0_9, %c0_10] : memref<16x32xf32, #tpu.memory_space<vmem>>, vector<16x32xf32>
    %c0_11 = arith.constant 0 : index
    %c0_12 = arith.constant 0 : index
    %18 = vector.load %arg5[%c0_11, %c0_12] : memref<128x32xf32, #tpu.memory_space<vmem>>, vector<128x32xf32>
    %cst_13 = arith.constant dense<0.000000e+00> : vector<16x32xf32>
    %19 = tpu.matmul %16, %18, %cst_13 {dimension_numbers = #tpu.dot_dimension_numbers<[1], [0], [0], [1], [0, 0, 1, 1], [], []>} : vector<16x128xf32>, vector<128x32xf32>, vector<16x32xf32> -> vector<16x32xf32>
    %20 = arith.addf %17, %19 : vector<16x32xf32>
    %c0_14 = arith.constant 0 : index
    %c0_15 = arith.constant 0 : index
    %21 = vector.load %arg8[%c0_14, %c0_15] : memref<16x32xf32, #tpu.memory_space<vmem>>, vector<16x32xf32>
    tpu.vector_store %arg8[%c0_14, %c0_15], %20 {strides = array<i32>} : memref<16x32xf32, #tpu.memory_space<vmem>>, vector<16x32xf32>,
    %c0_i32_16 = arith.constant 0 : i32
    %22 = arith.cmpi eq, %arg1, %c0_i32_16 : i32
    %23 = arith.extui %22 : i1 to i32
    %c0_i32_17 = arith.constant 0 : i32
    %24 = arith.cmpi ne, %23, %c0_i32_17 : i32
    scf.if %24 {
      %c0_18 = arith.constant 0 : index
      %c0_19 = arith.constant 0 : index
      %25 = vector.load %arg8[%c0_18, %c0_19] : memref<16x32xf32, #tpu.memory_space<vmem>>, vector<16x32xf32>
      %c0_20 = arith.constant 0 : index
      %c0_21 = arith.constant 0 : index
      %26 = vector.load %arg6[%c0_20, %c0_21] : memref<1x32xf32, #tpu.memory_space<vmem>>, vector<1x32xf32>
      %27 = vector.broadcast %26 : vector<1x32xf32> to vector<16x32xf32>
      %28 = arith.addf %25, %27 : vector<16x32xf32>
      %c0_22 = arith.constant 0 : index
      %c0_23 = arith.constant 0 : index
      %29 = vector.load %arg7[%c0_22, %c0_23] : memref<16x32xf32, #tpu.memory_space<vmem>>, vector<16x32xf32>
      tpu.vector_store %arg7[%c0_22, %c0_23], %28 {strides = array<i32>} : memref<16x32xf32, #tpu.memory_space<vmem>>, vector<16x32xf32>,
    } else {
    }
    return
  }
  func.func @transform_0(%arg0: i32, %arg1: i32) -> (i32, i32) {
    %c0_i32 = arith.constant 0 : i32
    %c0_i32_0 = arith.constant 0 : i32
    return %arg0, %c0_i32 : i32, i32
  }
  func.func @transform_1(%arg0: i32, %arg1: i32) -> (i32, i32) {
    %c0_i32 = arith.constant 0 : i32
    %c0_i32_0 = arith.constant 0 : i32
    return %c0_i32, %arg1 : i32, i32
  }
  func.func @transform_2(%arg0: i32, %arg1: i32) -> (i32, i32) {
    %c0_i32 = arith.constant 0 : i32
    %c0_i32_0 = arith.constant 0 : i32
    return %c0_i32, %arg1 : i32, i32
  }
  func.func @transform_3(%arg0: i32, %arg1: i32) -> (i32, i32) {
    %c0_i32 = arith.constant 0 : i32
    %c0_i32_0 = arith.constant 0 : i32
    return %arg1, %c0_i32 : i32, i32
  }
  func.func @transform_4(%arg0: i32, %arg1: i32) -> (i32, i32) {
    %c0_i32 = arith.constant 0 : i32
    %c0_i32_0 = arith.constant 0 : i32
    %c0_i32_1 = arith.constant 0 : i32
    return %c0_i32, %c0_i32_0 : i32, i32
  }
  func.func @transform_5(%arg0: i32, %arg1: i32) -> (i32, i32) {
    %c0_i32 = arith.constant 0 : i32
    %c0_i32_0 = arith.constant 0 : i32
    return %arg0, %c0_i32 : i32, i32
  }
}

</mosaic_0001>

<bundles_post_ra>
// kernel: tpu_custom_call.1
= control target key start
LH: loop header
LB: loop body
LE: loop exit
PB: predicated region body
PF: predicated region fallthrough
CT: control target
= control target key end

     0   :  { %vm25_vm0 = vcmask 261120   ;;  %s534_s0 = inlined_call_operand.vmem [shape: f32[16,32], index: 0, kind: input, shape index: {}]   ;;  %s535_s1 = inlined_call_operand.vmem [shape: f32[32,128], index: 1, kind: input, shape index: {}]   ;;  %s536_s2 = inlined_call_operand.vmem [shape: f32[1,128], index: 2, kind: input, shape index: {}]   ;;  %s537_s3 = inlined_call_operand.vmem [shape: f32[128,32], index: 3, kind: input, shape index: {}]   ;;  %s538_s4 = inlined_call_operand.vmem [shape: f32[1,32], index: 4, kind: input, shape index: {}]   ;;  %s539_s5 = inlined_call_operand.hbm [shape: f32[16,32], index: 5, kind: output, shape index: {}]  }
   0x1   :  { %v30_v0 = vld [vmem:[%s535_s1] sm:$0xff]  ;;  %v31_v1 = vld [vmem:[%s535_s1 + $0x8] sm:$0xff]  ;;  %v32_v2 = vld [vmem:[%s535_s1 + $0x10] sm:$0xff] }
   0x2   :  { %v336_v3 = vpack.c.bf16 %v31_v1, %v30_v0  ;;  %v33_v4 = vld [vmem:[%s535_s1 + $0x18] sm:$0xff]  ;;  %v28_v5 = vld [vmem:[%s534_s0] sm:$0xff]  ;;  %v136_v8 = vld [vmem:[%s537_s3 + $0x8] sm:$0xff] }
   0x3   :  { %v340_v6 = vpack.c.bf16 %v33_v4, %v32_v2  ;;  %298 = vmatprep.mubr.msk.f32.mxu0 %vm25_vm0, %v28_v5  ;;  %v135_v7 = vld [vmem:[%s537_s3] sm:$0xff]  ;;  %v137_v9 = vld [vmem:[%s537_s3 + $0x10] sm:$0xff]  ;;  %v138_v11 = vld [vmem:[%s537_s3 + $0x18] sm:$0xff] }
   0x4   :  { %337 = vmatprep.subr.bf16.mxu0 %v336_v3  ;;  %v344_v10 = vpack.c.bf16 %v136_v8, %v135_v7  ;;  %v348_v12 = vpack.c.bf16 %v138_v11, %v137_v9  ;;  %v139_v13 = vld [vmem:[%s537_s3 + $0x20] sm:$0xff]  ;;  %v140_v14 = vld [vmem:[%s537_s3 + $0x28] sm:$0xff] }
   0x5   :  { %339 = vmatpush3.bf16.msra.mxu0 %v336_v3 }
   0x6   :  { %10 = vsyncpa [#allocation4], 0  ;;  %341 = vmatprep.subr.bf16.mxu0 %v340_v6  ;;  %345 = vmatprep.subr.bf16.mxu1 %v344_v10  ;;  %v352_v15 = vpack.c.bf16 %v140_v14, %v139_v13  ;;  %v29_v16 = vld [vmem:[%s534_s0 + $0x8] sm:$0xff]  ;;  %v141_v17 = vld [vmem:[%s537_s3 + $0x30] sm:$0xff]  ;;  %v408_v32 = vmov 0.0   ;;  %s409_s11 = smov [#allocation3]  }
   0x7   :  { %347 = vmatpush3.bf16.msra.mxu1 %v344_v10  ;;  %v142_v18 = vld [vmem:[%s537_s3 + $0x38] sm:$0xff]  ;;  %v143_v20 = vld [vmem:[%s537_s3 + $0x40] sm:$0xff]  ;;  %v144_v21 = vld [vmem:[%s537_s3 + $0x48] sm:$0xff]  ;;  %27 = vst.msk [vmem:[#allocation2 + $0x8] sm:$0xff] %vm25_vm0, %v408_v32  ;;  %s251_s12 = sshll.u32 %s409_s11, 4  ;;  %s252_s12 = int_to_ptr.vmem [resolvable:$true] %s251_s12 }
   0x8   :  { %349 = vmatprep.subr.bf16.mxu1 %v348_v12  ;;  %v356_v19 = vpack.c.bf16 %v142_v18, %v141_v17  ;;  %v360_v22 = vpack.c.bf16 %v144_v21, %v143_v20  ;;  %v145_v23 = vld [vmem:[%s537_s3 + $0x50] sm:$0xff]  ;;  %v146_v24 = vld [vmem:[%s537_s3 + $0x58] sm:$0xff]  ;;  %v147_v26 = vld [vmem:[%s537_s3 + $0x60] sm:$0xff]  ;;  %26 = vst.msk [vmem:[#allocation2] sm:$0xff] %vm25_vm0, %v408_v32  ;;  %s384_s13 = scalar_lea.vmem %s252_s12, 256  ;;  %p389_p1 = scmp.lt.s32.totalorder %s252_s12, %s252_s12 }
   0x9   :  { %343 = vmatpush3.bf16.msra.mxu0 %v340_v6  ;;  %v364_v25 = vpack.c.bf16 %v146_v24, %v145_v23  ;;  %v148_v27 = vld [vmem:[%s537_s3 + $0x68] sm:$0xff]  ;;  %v149_v29 = vld [vmem:[%s537_s3 + $0x70] sm:$0xff]  ;;  %v150_v30 = vld [vmem:[%s537_s3 + $0x78] sm:$0xff]  ;;  %p385_p0 = scmp.ne.s32.totalorder %s252_s12, %s384_s13  ;;  %p390_p2 = scmp.lt.s32.totalorder %s384_s13, %s384_s13 }
   0xa   :  { %v368_v28 = vpack.c.bf16 %v148_v27, %v147_v26  ;;  %v372_v31 = vpack.c.bf16 %v150_v30, %v149_v29  ;;  %v262_v33 = vld [vmem:[%s536_s2] ss:$0 sm:$0xff] }
   0xb   :  { %351 = vmatpush3.bf16.msra.mxu1 %v348_v12  ;;  %v265_v54 = vld [vmem:[%s538_s4] ss:$0 sm:$0xff]  ;;  %p391_p3 = por %p390_p2, %p389_p1 }
   0xc   :  { %299 = vmatmul.mubr.msk.f32.vlgmr.msra.gmra.mrb[0].mxu0 %vm25_vm0, %v29_v16  ;;  %353 = vmatprep.subr.bf16.mxu1 %v352_v15 }
   0xd   :  { %p392_p4 = pnand %p391_p3, %p385_p0 }
   0xe   :  { %v134_v48 = vld [vmem:[#allocation2 + $0x8] sm:$0xff] }
   0xf   :  { %355 = vmatpush3.bf16.msra.mxu1 %v352_v15  ;;  %v133_v49 = vld [vmem:[#allocation2] sm:$0xff] }
  0x10   :  { %357 = vmatprep.subr.bf16.mxu1 %v356_v19 }
  0x13   :  { %359 = vmatpush3.bf16.msra.mxu1 %v356_v19 }
  0x14   :  { %361 = vmatprep.subr.bf16.mxu1 %v360_v22 }
  0x17   :  { %363 = vmatpush3.bf16.msra.mxu1 %v360_v22 }
  0x18   :  { %365 = vmatprep.subr.bf16.mxu1 %v364_v25 }
  0x1b   :  { %367 = vmatpush3.bf16.msra.mxu1 %v364_v25 }
  0x1c   :  { %369 = vmatprep.subr.bf16.mxu1 %v368_v28 }
  0x1f   :  { %371 = vmatpush3.bf16.msra.mxu1 %v368_v28 }
  0x20   :  { %373 = vmatprep.subr.bf16.mxu1 %v372_v31 }
  0x23   :  { %375 = vmatpush3.bf16.msra.mxu1 %v372_v31 }
  0xdf   :  { %v300_v34 = vpop.f32.mrb[0].mxu0 }
  0xe0   :  { %v120_v35 = vadd.f32 %v300_v34, %v262_v33  ;;  %v114_v36 = vpop.f32.mrb[1].mxu0 }
  0xe1   :  { %v115_v37 = vadd.f32 %v262_v33, %v114_v36 }
  0xe2   :  { %v126_v38 = vmul.f32 0.70710677, %v120_v35  ;;  %v124_v45 = vmul.f32 0.5, %v120_v35 }
  0xe3   :  { %v125_v39 = vmul.f32 0.70710677, %v115_v37  ;;  %v123_v43 = vmul.f32 0.5, %v115_v37 }
  0xe4   :  { %380 = verf.f32 %v126_v38 }
  0xe5   :  { %382 = verf.f32 %v125_v39 }
  0xee   :  { %v381_v40 = vpop.eup %380 }
  0xef   :  { %v383_v41 = vpop.eup %382  ;;  %v130_v42 = vadd.f32 1.0, %v381_v40 }
  0xf0   :  { %v129_v44 = vadd.f32 1.0, %v383_v41 }
  0xf1   :  { %v132_v47 = vmul.f32 %v130_v42, %v124_v45 }
  0xf2   :  { %v131_v46 = vmul.f32 %v129_v44, %v123_v43 }
  0xf4   :  { %333 = vmatprep.mubr.f32.mxu1 %v131_v46 }
  0xf5   :  { %334 = vmatmul.mubr.f32.vlgmr.msra.gmra.mrb[0].mxu1 %v132_v47 }
 0x1c8   :  { %v335_v50 = vpop.f32.mrb[0].mxu1 }
 0x1c9   :  { %v227_v51 = vadd.f32 %v335_v50, %v134_v48  ;;  %v217_v52 = vpop.f32.mrb[1].mxu1 }
 0x1ca   :  { %v226_v53 = vadd.f32 %v217_v52, %v133_v49 }
 0x1cb   :  { %229 = vst.msk [vmem:[#allocation2 + $0x8] sm:$0xff] %vm25_vm0, %v227_v51 }
 0x1cc   :  { %228 = vst.msk [vmem:[#allocation2] sm:$0xff] %vm25_vm0, %v226_v53 }
 0x1d2   :  { %v234_v55 = vld [vmem:[#allocation2 + $0x8] sm:$0xff] }
 0x1d3   :  { %v233_v56 = vld [vmem:[#allocation2] sm:$0xff]  ;;  %v243_v57 = vadd.f32 %v265_v54, %v234_v55 }
 0x1d4   :  { %v242_v58 = vadd.f32 %v265_v54, %v233_v56 }
 0x1d5   :  { %245 = vst.msk [vmem:[#allocation3 + $0x8] sm:$0xff] %vm25_vm0, %v243_v57 }
 0x1d6   :  { %244 = vst.msk [vmem:[#allocation3] sm:$0xff] %vm25_vm0, %v242_v58 }
 0x1d7   :  { %395 = shalt.err (!%p392_p4)
}
 0x1d8   :  { %s396_s15 = scalar_lea.hbm %s539_s5, 256 }
 0x1d9   :  { %p397_p5 = scmp.ne.s32.totalorder %s539_s5, %s396_s15  ;;  %p400_p6 = scmp.lt.u32.totalorder %s396_s15, %s539_s5 }
 0x1db   :  { %p402_p7 = pnand %p400_p6, %p397_p5 }
 0x1dd   :  { %405 = shalt.err (!%p402_p7)
}
 0x1de   :  { %s410_s20 = smov 128   ;;  %s411_s21 = smov 8  }
 0x1df   :  { %257 = dma.vmem_to_hbm [thread:$0]  %s252_s12, 256, %s539_s5, [#allocation4], %s410_s20, %s410_s20, %s411_s21  }
 0x1e0   :  { %406 = dma.done.wait [#allocation4], 256  }
 0x1e1   :  { %407 = vsyncadd [#allocation4], 4294967040 }
 0x1e2   :  { %261 = vsyncpa [#allocation4], 1 }

</bundles_post_ra>
